<compile_context>
chip_gen: v7x
topology: tpu7x:2x2x1
jax: 0.10.0
libtpu: 0.0.40
codegen_flags: <defaults>
</compile_context>

<pallas_src>
import math

import jax
import jax.numpy as jnp
from jax.experimental import pallas as pl
from jax.experimental.pallas import tpu as pltpu

_LANES = 1024        # lane-dense slab width (multiple of 128)
_BLOCK_ROWS = 512    # 512 x 1024 f32 = 2 MiB input tile (multiple of 32 -> safe for bf16/int8 too)


def _make_partial_sum_kernel(block_rows, valid_rows, needs_mask, lanes):
    """Per-block sum of (pred-true)^2, emitted as an (lanes//128, 128) tile."""

    def kernel(pred_ref, true_ref, out_ref):
        p = pred_ref[...].astype(jnp.float32)
        t = true_ref[...].astype(jnp.float32)
        d = p - t
        sq = d * d
        if needs_mask:
            # Ragged tail block: rows past `valid_rows` hold undefined data
            # (clipped input DMA) -> zero them before reducing.
            i = pl.program_id(0)
            row = jax.lax.broadcasted_iota(jnp.int32, sq.shape, 0) + i * block_rows
            sq = jnp.where(row < valid_rows, sq, 0.0)
        col = jnp.sum(sq, axis=0)                       # (lanes,)
        out_ref[...] = col.reshape(lanes // 128, 128)   # lane-dense partial-sum tile

    return kernel


def point_wise_mse(pred, true):
    """Equivalent of torch.nn.MSELoss()(pred, true): scalar mean squared error."""
    assert pred.shape == true.shape, "pred/true must have identical shapes"
    total = math.prod(pred.shape) if pred.shape else 1

    pf = pred.reshape(-1)
    tf = true.reshape(-1)

    # Lane-dense slab (rows, 1024). Only pad the lane remainder when required;
    # padded zeros contribute 0 to the squared-error sum.
    rem = total % _LANES
    if rem:
        pad = _LANES - rem
        pf = jnp.pad(pf, (0, pad))
        tf = jnp.pad(tf, (0, pad))
    rows = pf.shape[0] // _LANES
    p2 = pf.reshape(rows, _LANES)
    t2 = tf.reshape(rows, _LANES)

    block_rows = min(_BLOCK_ROWS, rows)
    num_blocks = pl.cdiv(rows, block_rows)
    needs_mask = (rows % block_rows) != 0
    sub = _LANES // 128  # 8

    in_spec = pl.BlockSpec((block_rows, _LANES), lambda i: (i, 0))
    out_spec = pl.BlockSpec((sub, 128), lambda i: (i, 0))

    partials = pl.pallas_call(
        _make_partial_sum_kernel(block_rows, rows, needs_mask, _LANES),
        out_shape=jax.ShapeDtypeStruct((num_blocks * sub, 128), jnp.float32),
        grid=(num_blocks,),
        in_specs=[in_spec, in_spec],
        out_specs=out_spec,
        compiler_params=pltpu.CompilerParams(
            dimension_semantics=("parallel",),       # lets v7x shard the grid across its 2 TCs
            vmem_limit_bytes=32 * 1024 * 1024,       # explicit; working set ~8 MiB fits every gen
        ),
    )(p2, t2)

    # Tiny final reduction (num_blocks * 1024 floats) + mean in plain JAX.
    return (jnp.sum(partials) / total).astype(pred.dtype)


if __name__ == "__main__":
    key = jax.random.PRNGKey(0)
    k1, k2, k3, k4 = jax.random.split(key, 4)

    mse_fn = jax.jit(point_wise_mse)

    # Small NCHW shapes consistent with an image-style prediction task.
    pred = jax.random.normal(k1, (2, 4, 16, 16), dtype=jnp.float32)
    true = jax.random.normal(k2, (2, 4, 16, 16), dtype=jnp.float32)

    out = jax.block_until_ready(mse_fn(pred, true))
    ref = jnp.mean((pred - true) ** 2)
    assert out.shape == ()
    assert jnp.allclose(out, ref, atol=1e-6, rtol=1e-4), (out, ref)

    # Secondary check: exercises the multi-block grid, lane-remainder padding
    # and the ragged-tail mask path.
    pred2 = jax.random.normal(k3, (1, 1, 1030, 700), dtype=jnp.float32)
    true2 = jax.random.normal(k4, (1, 1, 1030, 700), dtype=jnp.float32)
    out2 = jax.block_until_ready(mse_fn(pred2, true2))
    ref2 = jnp.mean((pred2 - true2) ** 2)
    assert jnp.allclose(out2, ref2, atol=1e-6, rtol=1e-4), (out2, ref2)

    print("KERNEL_OK")
</pallas_src>

<mosaic_0001>
module attributes {stable_mosaic.version = 11 : i64} {
  func.func @kernel(%arg0: i32, %arg1: memref<2x1024xf32, #tpu.memory_space<vmem>>, %arg2: memref<2x1024xf32, #tpu.memory_space<vmem>>, %arg3: memref<8x128xf32, #tpu.memory_space<vmem>>) attributes {dimension_semantics = [#tpu.dimension_semantics<parallel>], iteration_bounds = array<i64: 1>, scalar_prefetch = 0 : i64, scratch_operands = 0 : i64, tpu.core_type = #tpu.core_type<tc>, window_params = [{transform_indices = @transform_0, window_bounds = array<i64: 2, 1024>}, {transform_indices = @transform_1, window_bounds = array<i64: 2, 1024>}, {transform_indices = @transform_2, window_bounds = array<i64: 8, 128>}]} {
    %c0 = arith.constant 0 : index
    %c0_0 = arith.constant 0 : index
    %0 = vector.load %arg1[%c0, %c0_0] : memref<2x1024xf32, #tpu.memory_space<vmem>>, vector<2x1024xf32>
    %c0_1 = arith.constant 0 : index
    %c0_2 = arith.constant 0 : index
    %1 = vector.load %arg2[%c0_1, %c0_2] : memref<2x1024xf32, #tpu.memory_space<vmem>>, vector<2x1024xf32>
    %2 = arith.subf %0, %1 : vector<2x1024xf32>
    %3 = arith.mulf %2, %2 : vector<2x1024xf32>
    %cst = arith.constant dense<0.000000e+00> : vector<1024xf32>
    %4 = vector.multi_reduction <add>, %3, %cst [0] : vector<2x1024xf32> to vector<1024xf32>
    %5 = vector.shape_cast %4 : vector<1024xf32> to vector<8x128xf32>
    %c0_3 = arith.constant 0 : index
    %c0_4 = arith.constant 0 : index
    %6 = vector.load %arg3[%c0_3, %c0_4] : memref<8x128xf32, #tpu.memory_space<vmem>>, vector<8x128xf32>
    tpu.vector_store %arg3[%c0_3, %c0_4], %5 {strides = array<i32>} : memref<8x128xf32, #tpu.memory_space<vmem>>, vector<8x128xf32>,
    return
  }
  func.func @transform_0(%arg0: i32) -> (i32, i32) {
    %c0_i32 = arith.constant 0 : i32
    %c0_i32_0 = arith.constant 0 : i32
    return %arg0, %c0_i32 : i32, i32
  }
  func.func @transform_1(%arg0: i32) -> (i32, i32) {
    %c0_i32 = arith.constant 0 : i32
    %c0_i32_0 = arith.constant 0 : i32
    return %arg0, %c0_i32 : i32, i32
  }
  func.func @transform_2(%arg0: i32) -> (i32, i32) {
    %c0_i32 = arith.constant 0 : i32
    %c0_i32_0 = arith.constant 0 : i32
    return %arg0, %c0_i32 : i32, i32
  }
}

</mosaic_0001>

<bundles_post_ra>
// kernel: point_wise_mse.1
= control target key start
LH: loop header
LB: loop body
LE: loop exit
PB: predicated region body
PF: predicated region fallthrough
CT: control target
= control target key end

     0   :  { %v25_v0 = vlaneseq  ;;  %v163_v3 = vmov 1983009808   ;;  %vm63_vm0 = vcmask 1041408   ;;  %s223_s0 = inlined_call_operand.vmem [shape: f32[2,1024], index: 0, kind: input, shape index: {}]   ;;  %s224_s1 = inlined_call_operand.vmem [shape: f32[2,1024], index: 1, kind: input, shape index: {}]   ;;  %s225_s2 = inlined_call_operand.vmem [shape: f32[8,128], index: 2, kind: output, shape index: {}]  }
   0x1   :  { %v11_v1 = vld [vmem:[%s223_s0] sm:$0xff]  ;;  %v23_v4 = vunpack.c.l.s4 %v163_v3  ;;  %v12_v5 = vld [vmem:[%s223_s0 + $0x8] sm:$0xff] }
   0x2   :  { %v13_v2 = vld [vmem:[%s224_s1] sm:$0xff]  ;;  %v26_v7 = vshrl.u32 %v25_v0, 7  ;;  %v14_v8 = vld [vmem:[%s224_s1 + $0x8] sm:$0xff] }
   0x3   :  { %v15_v6 = vsub.f32 %v11_v1, %v13_v2  ;;  %v24_v9 = vunpack.c.0.s8 %v23_v4  ;;  %v16_v10 = vsub.f32 %v12_v5, %v14_v8 }
   0x5   :  { %v17_v11 = vmul.f32 %v15_v6, %v15_v6  ;;  %v27_v12 = vsub.s32 %v24_v9, %v26_v7  ;;  %v18_v13 = vmul.f32 %v16_v10, %v16_v10 }
   0x7   :  { %v21_v14 = vcombine.high %v17_v11, %v17_v11  ;;  %v28_v15 = vrot.slane %v17_v11, %v27_v12  ;;  %v45_v16 = vrot.slane %v18_v13, %v27_v12  ;;  %v38_v17 = vcombine.high %v18_v13, %v18_v13 }
   0x9   :  { %v35_v18 = vrot.slane %v21_v14, %v27_v12  ;;  %v64_v19 = vsel %vm63_vm0, %v28_v15, 0.0  ;;  %v36_v20 = vcombine.high %v28_v15, %v28_v15  ;;  %v92_v21 = vsel %vm63_vm0, %v45_v16, 0.0 }
   0xa   :  { %v53_v22 = vcombine.high %v45_v16, %v45_v16  ;;  %v65_v23 = vrot.slane %v64_v19, 4  ;;  %v93_v26 = vrot.slane %v92_v21, 4  ;;  %v52_v30 = vrot.slane %v38_v17, %v27_v12 }
   0xb   :  { %v78_v24 = vsel %vm63_vm0, %v35_v18, 0.0  ;;  %v37_v25 = vcombine.high %v35_v18, %v35_v18  ;;  %v71_v27 = vsel %vm63_vm0, %v36_v20, 0.0 }
   0xc   :  { %v79_v28 = vrot.slane %v78_v24, 4  ;;  %v99_v29 = vsel %vm63_vm0, %v53_v22, 0.0  ;;  %v66_v31 = vadd.f32 %v65_v23, %v64_v19  ;;  %v72_v32 = vrot.slane %v71_v27, 4 }
   0xd   :  { %v85_v33 = vsel %vm63_vm0, %v37_v25, 0.0  ;;  %v94_v34 = vadd.f32 %v93_v26, %v92_v21  ;;  %v100_v37 = vrot.slane %v99_v29, 4  ;;  %v106_v38 = vsel %vm63_vm0, %v52_v30, 0.0 }
   0xe   :  { %v80_v35 = vadd.f32 %v79_v28, %v78_v24  ;;  %v86_v36 = vrot.slane %v85_v33, 4  ;;  %v67_v39 = vrot.slane %v66_v31, 2  ;;  %v73_v40 = vadd.f32 %v72_v32, %v71_v27 }
   0xf   :  { %v95_v41 = vrot.slane %v94_v34, 2  ;;  %v107_v42 = vrot.slane %v106_v38, 4  ;;  %v101_v45 = vadd.f32 %v100_v37, %v99_v29  ;;  %v54_v46 = vcombine.high %v52_v30, %v52_v30 }
  0x10   :  { %v81_v43 = vrot.slane %v80_v35, 2  ;;  %v87_v44 = vadd.f32 %v86_v36, %v85_v33  ;;  %v68_v47 = vadd.f32 %v67_v39, %v66_v31  ;;  %v74_v48 = vrot.slane %v73_v40, 2 }
  0x11   :  { %v96_v49 = vadd.f32 %v95_v41, %v94_v34  ;;  %v108_v50 = vadd.f32 %v107_v42, %v106_v38  ;;  %v102_v53 = vrot.slane %v101_v45, 2  ;;  %v113_v54 = vsel %vm63_vm0, %v54_v46, 0.0 }
  0x12   :  { %v82_v51 = vadd.f32 %v81_v43, %v80_v35  ;;  %v88_v52 = vrot.slane %v87_v44, 2  ;;  %v69_v55 = vrot.slane %v68_v47, 1  ;;  %v75_v56 = vadd.f32 %v74_v48, %v73_v40 }
  0x13   :  { %v97_v57 = vrot.slane %v96_v49, 1  ;;  %v109_v58 = vrot.slane %v108_v50, 2  ;;  %v103_v61 = vadd.f32 %v102_v53, %v101_v45  ;;  %v114_v62 = vrot.slane %v113_v54, 4 }
  0x14   :  { %v83_v59 = vrot.slane %v82_v51, 1  ;;  %v89_v60 = vadd.f32 %v88_v52, %v87_v44  ;;  %v70_v63 = vadd.f32 %v69_v55, %v68_v47  ;;  %v76_v0 = vrot.slane %v75_v56, 1 }
  0x15   :  { %v98_v1 = vadd.f32 %v97_v57, %v96_v49  ;;  %v110_v2 = vadd.f32 %v109_v58, %v108_v50  ;;  %v104_v5 = vrot.slane %v103_v61, 1  ;;  %v115_v6 = vadd.f32 %v114_v62, %v113_v54 }
  0x16   :  { %v84_v3 = vadd.f32 %v83_v59, %v82_v51  ;;  %v90_v4 = vrot.slane %v89_v60, 1  ;;  %121 = vst [vmem:[%s225_s2] ss:$8 sm:$0x1] %v70_v63  ;;  %v77_v7 = vadd.f32 %v76_v0, %v75_v56 }
  0x17   :  { %158 = vst [vmem:[%s225_s2 + $0x4] ss:$8 sm:$0x1] %v98_v1  ;;  %v111_v8 = vrot.slane %v110_v2, 1  ;;  %v105_v10 = vadd.f32 %v104_v5, %v103_v61  ;;  %v116_v11 = vrot.slane %v115_v6, 2 }
  0x18   :  { %156 = vst [vmem:[%s225_s2 + $0x2] ss:$8 sm:$0x1] %v84_v3  ;;  %v91_v9 = vadd.f32 %v90_v4, %v89_v60  ;;  %155 = vst [vmem:[%s225_s2 + $0x1] ss:$8 sm:$0x1] %v77_v7 }
  0x19   :  { %v112_v12 = vadd.f32 %v111_v8, %v110_v2  ;;  %159 = vst [vmem:[%s225_s2 + $0x5] ss:$8 sm:$0x1] %v105_v10  ;;  %v117_v13 = vadd.f32 %v116_v11, %v115_v6 }
  0x1a   :  { %157 = vst [vmem:[%s225_s2 + $0x3] ss:$8 sm:$0x1] %v91_v9 }
  0x1b   :  { %160 = vst [vmem:[%s225_s2 + $0x6] ss:$8 sm:$0x1] %v112_v12  ;;  %v118_v14 = vrot.slane %v117_v13, 1 }
  0x1d   :  { %v119_v15 = vadd.f32 %v118_v14, %v117_v13 }
  0x1f   :  { %161 = vst [vmem:[%s225_s2 + $0x7] ss:$8 sm:$0x1] %v119_v15 }

</bundles_post_ra>
